<compile_context>
chip_gen: v5e
topology: v5e:2x2
jax: 0.10.0
libtpu: 0.0.40
codegen_flags: <defaults>
</compile_context>

<pallas_src>
import functools
import math

import numpy as np
import jax
import jax.numpy as jnp
from jax.experimental import pallas as pl
from jax.experimental.pallas import tpu as pltpu


def _round_up(x: int, m: int) -> int:
    return ((x + m - 1) // m) * m


def _lcm(a: int, b: int) -> int:
    return a * b // math.gcd(a, b)


# ----------------------------- parameter setup ------------------------------

def _hann_window_periodic(win_length: int) -> np.ndarray:
    # torch.hann_window default (periodic=True)
    n = np.arange(win_length, dtype=np.float64)
    return 0.5 - 0.5 * np.cos(2.0 * np.pi * n / win_length)


def _mel_filterbank_htk(n_freqs, f_min, f_max, n_mels, sample_rate):
    # torchaudio.functional.melscale_fbanks(norm=None, mel_scale="htk")
    all_freqs = np.linspace(0.0, sample_rate / 2.0, n_freqs)
    m_min = 2595.0 * np.log10(1.0 + f_min / 700.0)
    m_max = 2595.0 * np.log10(1.0 + f_max / 700.0)
    m_pts = np.linspace(m_min, m_max, n_mels + 2)
    f_pts = 700.0 * (10.0 ** (m_pts / 2595.0) - 1.0)
    f_diff = f_pts[1:] - f_pts[:-1]                       # (n_mels + 1,)
    slopes = f_pts[None, :] - all_freqs[:, None]          # (n_freqs, n_mels + 2)
    down = -slopes[:, :-2] / f_diff[:-1]
    up = slopes[:, 2:] / f_diff[1:]
    return np.maximum(0.0, np.minimum(down, up))          # (n_freqs, n_mels)


def _dft_matrices(n_fft: int, win_length: int):
    # Real-FFT expressed as matmuls against (window * cos) / (-window * sin).
    win = _hann_window_periodic(win_length)
    if win_length < n_fft:            # torch.stft center-pads the window
        lpad = (n_fft - win_length) // 2
        w = np.zeros(n_fft, dtype=np.float64)
        w[lpad:lpad + win_length] = win
    else:
        w = win
    n_freqs = n_fft // 2 + 1
    t = np.arange(n_fft, dtype=np.float64)[:, None]        # (n_fft, 1)
    k = np.arange(n_freqs, dtype=np.float64)[None, :]      # (1, n_freqs)
    ang = 2.0 * np.pi * t * k / n_fft
    cos_w = w[:, None] * np.cos(ang)                        # (n_fft, n_freqs)
    sin_w = -w[:, None] * np.sin(ang)                       # (n_fft, n_freqs)
    return cos_w, sin_w


def _build_constants(n_fft, win_length, n_mels, sample_rate, f_min, f_max,
                     normalized, matmul_dtype):
    """Packed DFT weight + mel filterbank.

    w:  (n_fft, W) with cos columns for k=0..n_freqs-1 followed by the
        non-zero sin columns (DC and, for even n_fft, Nyquist sin are dropped).
    fb: (W, Mpad) mel filterbank whose rows are duplicated onto the packed sin
        lanes, so mel = (y*y) @ fb already sums re^2+im^2 per bin.
    """
    n_freqs = n_fft // 2 + 1
    cos_w, sin_w = _dft_matrices(n_fft, win_length)
    sin_keep = [k for k in range(1, n_freqs)
                if not (n_fft % 2 == 0 and k == n_fft // 2)]
    W = _round_up(n_freqs + len(sin_keep), 128)
    w = np.zeros((n_fft, W), dtype=np.float64)
    w[:, :n_freqs] = cos_w
    w[:, n_freqs:n_freqs + len(sin_keep)] = sin_w[:, sin_keep]
    if normalized:                                          # torchaudio window norm
        win = _hann_window_periodic(win_length)
        w *= 1.0 / math.sqrt(float(np.sum(win ** 2)))

    fb = _mel_filterbank_htk(n_freqs, f_min, f_max, n_mels, sample_rate)
    n_mels_pad = _round_up(n_mels, 128)
    fb2 = np.zeros((W, n_mels_pad), dtype=np.float64)
    fb2[:n_freqs, :n_mels] = fb
    fb2[n_freqs:n_freqs + len(sin_keep), :n_mels] = fb[sin_keep, :]
    return (jnp.asarray(w, dtype=matmul_dtype),
            jnp.asarray(fb2, dtype=matmul_dtype),
            W, n_mels_pad)


# ------------------------------- Pallas kernels -------------------------------

def _logmel_transposed(frames, w, fb, *, n_mels_sub, floor_level, log):
    # frames: (tm, n_fft)  w: (n_fft, W) packed [cos | sin!=0]  fb: (W, Mpad)
    y = jnp.dot(frames, w, preferred_element_type=jnp.float32)      # MXU
    power = y * y                                                   # VPU
    mel = jnp.dot(power.astype(fb.dtype), fb,
                  preferred_element_type=jnp.float32)               # MXU (tm, Mpad)
    if log:
        mel = jnp.log10(floor_level + mel)                          # EUP slot
    mel_t = jnp.transpose(mel)                                      # XLU (Mpad, tm)
    return mel_t[:n_mels_sub, :]                                    # lane-dense store


def _mel_chunk_kernel(a_ref, b_ref, w_ref, fb_ref, o_ref, *,
                      n_overlap, n_mels_sub, floor_level, log):
    # a_ref: (tm, hop)  = hop-chunks [j*tm, (j+1)*tm) of one waveform
    # b_ref: (Rb, hop)  = hop-chunks [(j+1)*tm, (j+1)*tm + Rb) (first R-1 used)
    a = a_ref[...].astype(w_ref.dtype)      # cast BEFORE the rebuild (bf16 path)
    tm = a.shape[0]
    if n_overlap > 1:
        ab = jnp.concatenate([a, b_ref[...].astype(w_ref.dtype)], axis=0)
        frames = jnp.concatenate(
            [ab[r:r + tm, :] for r in range(n_overlap)], axis=1)     # (tm, n_fft)
    else:
        frames = a                                                   # hop == n_fft
    o_ref[...] = _logmel_transposed(frames, w_ref[...], fb_ref[...],
                                    n_mels_sub=n_mels_sub,
                                    floor_level=floor_level,
                                    log=log).astype(o_ref.dtype)


def _mel_frames_kernel(f_ref, w_ref, fb_ref, o_ref, *,
                       n_mels_sub, floor_level, log):
    frames = f_ref[...].astype(w_ref.dtype)
    o_ref[...] = _logmel_transposed(frames, w_ref[...], fb_ref[...],
                                    n_mels_sub=n_mels_sub,
                                    floor_level=floor_level,
                                    log=log).astype(o_ref.dtype)


_VMEM_LIMIT = 48 * 1024 * 1024   # portable: v5e/v6e 128 MiB, v7x 64 MiB physical


def _mel_pallas_chunked(chunks, w, fb, *, n_overlap, rb, tm, n_blocks,
                        n_mels_sub, floor_level, log):
    s, _, hop = chunks.shape
    n_fft, wcols = w.shape
    mpad = fb.shape[1]
    step_b = tm // rb                     # rb divides tm by construction

    kernel = functools.partial(_mel_chunk_kernel, n_overlap=n_overlap,
                               n_mels_sub=n_mels_sub,
                               floor_level=floor_level, log=log)

    m_total = s * n_blocks * tm
    flops = (2 * m_total * n_fft * wcols + 2 * m_total * wcols * mpad
             + m_total * wcols)
    transcendentals = m_total * mpad if log else 0
    bytes_accessed = (chunks.size * chunks.dtype.itemsize
                      + w.size * w.dtype.itemsize + fb.size * fb.dtype.itemsize
                      + m_total * n_mels_sub * 4)

    return pl.pallas_call(
        kernel,
        out_shape=jax.ShapeDtypeStruct((s, n_mels_sub, n_blocks * tm),
                                       jnp.float32),
        grid=(s, n_blocks),
        in_specs=[
            pl.BlockSpec((None, tm, hop), lambda i, j: (i, j, 0)),
            pl.BlockSpec((None, rb, hop), lambda i, j: (i, (j + 1) * step_b, 0)),
            # Constant operands: grid-invariant index maps keep them resident
            # in VMEM instead of re-DMAing each step.
            pl.BlockSpec((n_fft, wcols), lambda i, j: (0, 0)),
            pl.BlockSpec((wcols, mpad), lambda i, j: (0, 0)),
        ],
        out_specs=pl.BlockSpec((None, n_mels_sub, tm), lambda i, j: (i, 0, j)),
        compiler_params=pltpu.CompilerParams(
            dimension_semantics=("parallel", "parallel"),
            vmem_limit_bytes=_VMEM_LIMIT),
        cost_estimate=pl.CostEstimate(flops=int(flops),
                                      transcendentals=int(transcendentals),
                                      bytes_accessed=int(bytes_accessed)),
    )(chunks, chunks, w, fb)


def _mel_pallas_frames(frames, w, fb, *, tm, n_blocks, n_mels_sub,
                       floor_level, log):
    s, _, n_fft = frames.shape
    _, wcols = w.shape
    mpad = fb.shape[1]
    kernel = functools.partial(_mel_frames_kernel, n_mels_sub=n_mels_sub,
                               floor_level=floor_level, log=log)
    m_total = s * n_blocks * tm
    flops = (2 * m_total * n_fft * wcols + 2 * m_total * wcols * mpad
             + m_total * wcols)
    transcendentals = m_total * mpad if log else 0
    bytes_accessed = (frames.size * frames.dtype.itemsize
                      + w.size * w.dtype.itemsize + fb.size * fb.dtype.itemsize
                      + m_total * n_mels_sub * 4)
    return pl.pallas_call(
        kernel,
        out_shape=jax.ShapeDtypeStruct((s, n_mels_sub, n_blocks * tm),
                                       jnp.float32),
        grid=(s, n_blocks),
        in_specs=[
            pl.BlockSpec((None, tm, n_fft), lambda i, j: (i, j, 0)),
            pl.BlockSpec((n_fft, wcols), lambda i, j: (0, 0)),
            pl.BlockSpec((wcols, mpad), lambda i, j: (0, 0)),
        ],
        out_specs=pl.BlockSpec((None, n_mels_sub, tm), lambda i, j: (i, 0, j)),
        compiler_params=pltpu.CompilerParams(
            dimension_semantics=("parallel", "parallel"),
            vmem_limit_bytes=_VMEM_LIMIT),
        cost_estimate=pl.CostEstimate(flops=int(flops),
                                      transcendentals=int(transcendentals),
                                      bytes_accessed=int(bytes_accessed)),
    )(frames, w, fb)


# ------------------------------ forward wrapper -------------------------------

def mel_spectrogram_wrapper(x,
                            n_fft: int = 128,
                            hop_length: int = 32,
                            win_length=None,
                            n_mels: int = 16,
                            sample_rate: float = 22050.0,
                            f_min: float = 0.0,
                            f_max=None,
                            log: bool = True,
                            normalized: bool = False,
                            floor_level: float = 1e-5,
                            tm: int = 1024,
                            matmul_dtype=jnp.float32):
    """JAX/Pallas forward pass of MelSpectrogramWrapper.

    matmul_dtype: dtype of BOTH matmuls (frames @ DFT and power @ fb), with
      f32 accumulation.  float32 (default) matches the torch reference
      closely; jnp.bfloat16 gives a large MXU speedup on every generation
      (v5e/v6e/v7x) at a small accuracy cost (validate before using).
    tm: frames per grid step.  1024-2048 amortizes the per-step overhead;
      it is clamped for tiny inputs and split for v7x two-core balance.
    """
    win_length = n_fft if win_length is None else win_length
    f_max = sample_rate / 2.0 if f_max is None else f_max
    n_mels_sub = _round_up(n_mels, 8)

    if x.ndim == 2:
        x = x[:, None, :]                                   # (B, 1, T)
    B, C, T = x.shape
    S = B * C
    x = x.astype(jnp.float32)

    # reflect padding (F.pad(..., 'reflect'))
    p = int((n_fft - hop_length) // 2)
    x = jnp.pad(x, ((0, 0), (0, 0), (p, p)), mode="reflect")
    length = T + 2 * p

    # pad_for_conv1d(kernel_size=n_fft, stride=hop_length, padding_total=0)
    n_frames = (length - n_fft + hop_length - 1) // hop_length + 1
    ideal_length = (n_frames - 1) * hop_length + n_fft
    if ideal_length > length:
        x = jnp.pad(x, ((0, 0), (0, 0), (0, ideal_length - length)))
    length = ideal_length

    w_j, fb_j, wcols, _ = _build_constants(n_fft, win_length, n_mels,
                                           sample_rate, f_min, f_max,
                                           normalized, matmul_dtype)

    if n_fft % hop_length == 0:
        # Fast path: gather-free framing. Each grid step DMAs tm contiguous
        # hop-chunks (+ a tiny Rb-row tail block) and rebuilds the tm
        # overlapping frames inside the kernel.
        R = n_fft // hop_length                  # chunks per frame
        Rb = _round_up(max(R - 1, 1), 8)         # tail rows, sublane aligned
        tm_req = _round_up(max(min(tm, _round_up(n_frames, 8)), 8), 8)
        tm_eff = _round_up(tm_req, Rb)
        if tm_eff < n_frames:                    # multi-block: lane-dense output
            tm_eff = _round_up(tm_req, _lcm(Rb, 128))
        n_blocks = -(-n_frames // tm_eff)
        # v7x megacore: make sure the parallel grid has >= 2 steps.
        if S == 1 and n_blocks == 1 and n_frames > 2 * max(Rb, 128):
            tm_half = _round_up(-(-n_frames // 2), _lcm(Rb, 128))
            if tm_half < tm_eff:
                tm_eff = tm_half
                n_blocks = -(-n_frames // tm_eff)
        rows_padded = (n_blocks + 1) * tm_eff    # divisible by tm_eff and Rb

        chunks = x.reshape(S, length // hop_length, hop_length)
        pad_rows = rows_padded - length // hop_length
        if pad_rows > 0:
            chunks = jnp.pad(chunks, ((0, 0), (0, pad_rows), (0, 0)))

        out = _mel_pallas_chunked(chunks, w_j, fb_j, n_overlap=R, rb=Rb,
                                  tm=tm_eff, n_blocks=n_blocks,
                                  n_mels_sub=n_mels_sub,
                                  floor_level=floor_level, log=log)
    else:
        # TODO(synk): hop_length does not divide n_fft -> fall back to an XLA
        # im2col gather (~n_fft/hop x HBM traffic) before the kernel; an
        # in-kernel pl.ANY + manual-DMA framing path would avoid it.
        idx = (np.arange(n_frames)[:, None] * hop_length
               + np.arange(n_fft)[None, :])
        frames = x.reshape(S, length)[:, idx]                # (S, n_frames, n_fft)
        tm_req = _round_up(max(min(tm, _round_up(n_frames, 8)), 8), 8)
        tm_eff = tm_req
        if tm_eff < n_frames:
            tm_eff = _round_up(tm_req, 128)
        n_blocks = -(-n_frames // tm_eff)
        if S == 1 and n_blocks == 1 and n_frames > 256:
            tm_half = _round_up(-(-n_frames // 2), 128)
            if tm_half < tm_eff:
                tm_eff = tm_half
                n_blocks = -(-n_frames // tm_eff)
        rows_padded = n_blocks * tm_eff
        if rows_padded > n_frames:
            frames = jnp.pad(frames, ((0, 0), (0, rows_padded - n_frames), (0, 0)))
        out = _mel_pallas_frames(frames, w_j, fb_j, tm=tm_eff,
                                 n_blocks=n_blocks, n_mels_sub=n_mels_sub,
                                 floor_level=floor_level, log=log)

    # out is already (S, mel, frame) ordered: only a cheap slice remains
    # (drops the padded tail frames / mel rows), no wrapper transpose.
    out = out[:, :n_mels, :n_frames]
    return out.reshape(B, C * n_mels, n_frames)


# ----------------------------------- main -------------------------------------

if __name__ == "__main__":
    key = jax.random.PRNGKey(0)
    # small, module-consistent shapes: batch=2, mono waveform of 512 samples
    x = jax.random.normal(key, (2, 512), dtype=jnp.float32)

    n_fft, hop, n_mels, sr = 128, 32, 16, 22050.0
    out = mel_spectrogram_wrapper(x, n_fft=n_fft, hop_length=hop,
                                  n_mels=n_mels, sample_rate=sr,
                                  log=True, floor_level=1e-5)
    out = jax.block_until_ready(out)

    # (B, C*n_mels, n_frames) = (2, 16, 16)
    assert out.shape == (2, 16, 16), out.shape
    assert bool(jnp.all(jnp.isfinite(out)))

    # float64 numpy reference (same math) to validate framing + DFT + mel path.
    x_np = np.asarray(x, dtype=np.float64)
    p = (n_fft - hop) // 2
    xp = np.pad(x_np, ((0, 0), (p, p)), mode="reflect")
    L = xp.shape[-1]
    n_frames = (L - n_fft + hop - 1) // hop + 1
    xp = np.pad(xp, ((0, 0), (0, (n_frames - 1) * hop + n_fft - L)))
    idx = np.arange(n_frames)[:, None] * hop + np.arange(n_fft)[None, :]
    frames = xp[:, idx]                                       # (B, n_frames, n_fft)
    cos_w, sin_w = _dft_matrices(n_fft, n_fft)
    power = (frames @ cos_w) ** 2 + (frames @ sin_w) ** 2
    fb = _mel_filterbank_htk(n_fft // 2 + 1, 0.0, sr / 2.0, n_mels, sr)
    ref = np.log10(1e-5 + power @ fb).transpose(0, 2, 1)      # (B, n_mels, n_frames)
    np.testing.assert_allclose(np.asarray(out), ref, rtol=1e-2, atol=1e-2)

    print("KERNEL_OK")
</pallas_src>

<mosaic_0001>
module attributes {stable_mosaic.version = 11 : i64} {
  func.func @_mel_chunk_kernel(%arg0: i32, %arg1: i32, %arg2: memref<1x16x32xf32, #tpu.memory_space<vmem>>, %arg3: memref<1x8x32xf32, #tpu.memory_space<vmem>>, %arg4: memref<128x128xf32, #tpu.memory_space<vmem>>, %arg5: memref<128x128xf32, #tpu.memory_space<vmem>>, %arg6: memref<1x16x16xf32, #tpu.memory_space<vmem>>) attributes {dimension_semantics = [#tpu.dimension_semantics<parallel>, #tpu.dimension_semantics<parallel>], iteration_bounds = array<i64: 2, 1>, scalar_prefetch = 0 : i64, scratch_operands = 0 : i64, tpu.core_type = #tpu.core_type<tc>, window_params = [{transform_indices = @transform_0, window_bounds = array<i64: 1, 16, 32>}, {transform_indices = @transform_1, window_bounds = array<i64: 1, 8, 32>}, {pipeline_mode = #tpu.pipeline_mode<synchronous>, transform_indices = @transform_2, window_bounds = array<i64: 128, 128>}, {pipeline_mode = #tpu.pipeline_mode<synchronous>, transform_indices = @transform_3, window_bounds = array<i64: 128, 128>}, {transform_indices = @transform_4, window_bounds = array<i64: 1, 16, 16>}]} {
    %c0 = arith.constant 0 : index
    %c0_0 = arith.constant 0 : index
    %c0_1 = arith.constant 0 : index
    %0 = vector.load %arg2[%c0, %c0_0, %c0_1] : memref<1x16x32xf32, #tpu.memory_space<vmem>>, vector<1x16x32xf32>
    %1 = vector.shape_cast %0 : vector<1x16x32xf32> to vector<16x32xf32>
    %c0_2 = arith.constant 0 : index
    %c0_3 = arith.constant 0 : index
    %c0_4 = arith.constant 0 : index
    %2 = vector.load %arg3[%c0_2, %c0_3, %c0_4] : memref<1x8x32xf32, #tpu.memory_space<vmem>>, vector<1x8x32xf32>
    %3 = vector.shape_cast %2 : vector<1x8x32xf32> to vector<8x32xf32>
    %4 = tpu.concatenate %1, %3 in 0 : vector<16x32xf32>, vector<8x32xf32> -> vector<24x32xf32>
    %5 = vector.extract_strided_slice %4 {offsets = [0, 0], sizes = [16, 32], strides = [1, 1]} : vector<24x32xf32> to vector<16x32xf32>
    %6 = vector.extract_strided_slice %4 {offsets = [1, 0], sizes = [16, 32], strides = [1, 1]} : vector<24x32xf32> to vector<16x32xf32>
    %7 = vector.extract_strided_slice %4 {offsets = [2, 0], sizes = [16, 32], strides = [1, 1]} : vector<24x32xf32> to vector<16x32xf32>
    %8 = vector.extract_strided_slice %4 {offsets = [3, 0], sizes = [16, 32], strides = [1, 1]} : vector<24x32xf32> to vector<16x32xf32>
    %9 = tpu.concatenate %5, %6, %7, %8 in 1 : vector<16x32xf32>, vector<16x32xf32>, vector<16x32xf32>, vector<16x32xf32> -> vector<16x128xf32>
    %c0_5 = arith.constant 0 : index
    %c0_6 = arith.constant 0 : index
    %10 = vector.load %arg4[%c0_5, %c0_6] : memref<128x128xf32, #tpu.memory_space<vmem>>, vector<128x128xf32>
    %c0_7 = arith.constant 0 : index
    %c0_8 = arith.constant 0 : index
    %11 = vector.load %arg5[%c0_7, %c0_8] : memref<128x128xf32, #tpu.memory_space<vmem>>, vector<128x128xf32>
    %cst = arith.constant dense<0.000000e+00> : vector<16x128xf32>
    %12 = tpu.matmul %9, %10, %cst {dimension_numbers = #tpu.dot_dimension_numbers<[1], [0], [0], [1], [0, 0, 1, 1], [], []>} : vector<16x128xf32>, vector<128x128xf32>, vector<16x128xf32> -> vector<16x128xf32>
    %13 = arith.mulf %12, %12 : vector<16x128xf32>
    %cst_9 = arith.constant dense<0.000000e+00> : vector<16x128xf32>
    %14 = tpu.matmul %13, %11, %cst_9 {dimension_numbers = #tpu.dot_dimension_numbers<[1], [0], [0], [1], [0, 0, 1, 1], [], []>} : vector<16x128xf32>, vector<128x128xf32>, vector<16x128xf32> -> vector<16x128xf32>
    %cst_10 = arith.constant 9.99999974E-6 : f32
    %15 = vector.broadcast %cst_10 : f32 to vector<16x128xf32>
    %16 = arith.addf %15, %14 : vector<16x128xf32>
    %17 = math.log %16 : vector<16x128xf32>
    %cst_11 = arith.constant 0.434294492 : f32
    %18 = vector.broadcast %cst_11 : f32 to vector<16x128xf32>
    %19 = arith.mulf %17, %18 : vector<16x128xf32>
    %20 = tpu.transpose %19, [1, 0] : vector<16x128xf32> -> vector<128x16xf32>
    %21 = vector.extract_strided_slice %20 {offsets = [0, 0], sizes = [16, 16], strides = [1, 1]} : vector<128x16xf32> to vector<16x16xf32>
    %c0_12 = arith.constant 0 : index
    %c0_13 = arith.constant 0 : index
    %c0_14 = arith.constant 0 : index
    %22 = vector.load %arg6[%c0_12, %c0_13, %c0_14] : memref<1x16x16xf32, #tpu.memory_space<vmem>>, vector<1x16x16xf32>
    %23 = vector.shape_cast %22 : vector<1x16x16xf32> to vector<16x16xf32>
    %24 = vector.shape_cast %21 : vector<16x16xf32> to vector<1x16x16xf32>
    tpu.vector_store %arg6[%c0_12, %c0_13, %c0_14], %24 {strides = array<i32>} : memref<1x16x16xf32, #tpu.memory_space<vmem>>, vector<1x16x16xf32>,
    return
  }
  func.func @transform_0(%arg0: i32, %arg1: i32) -> (i32, i32, i32) {
    %c0_i32 = arith.constant 0 : i32
    %c0_i32_0 = arith.constant 0 : i32
    return %arg0, %arg1, %c0_i32 : i32, i32, i32
  }
  func.func @transform_1(%arg0: i32, %arg1: i32) -> (i32, i32, i32) {
    %c1_i32 = arith.constant 1 : i32
    %0 = arith.addi %arg1, %c1_i32 : i32
    %c2_i32 = arith.constant 2 : i32
    %1 = arith.muli %0, %c2_i32 : i32
    %c0_i32 = arith.constant 0 : i32
    %c0_i32_0 = arith.constant 0 : i32
    return %arg0, %1, %c0_i32 : i32, i32, i32
  }
  func.func @transform_2(%arg0: i32, %arg1: i32) -> (i32, i32) {
    %c0_i32 = arith.constant 0 : i32
    %c0_i32_0 = arith.constant 0 : i32
    %c0_i32_1 = arith.constant 0 : i32
    return %c0_i32, %c0_i32_0 : i32, i32
  }
  func.func @transform_3(%arg0: i32, %arg1: i32) -> (i32, i32) {
    %c0_i32 = arith.constant 0 : i32
    %c0_i32_0 = arith.constant 0 : i32
    %c0_i32_1 = arith.constant 0 : i32
    return %c0_i32, %c0_i32_0 : i32, i32
  }
  func.func @transform_4(%arg0: i32, %arg1: i32) -> (i32, i32, i32) {
    %c0_i32 = arith.constant 0 : i32
    %c0_i32_0 = arith.constant 0 : i32
    return %arg0, %c0_i32, %arg1 : i32, i32, i32
  }
}

</mosaic_0001>

<bundles_post_ra>
// kernel: tpu_custom_call.1
= control target key start
LH: loop header
LB: loop body
LE: loop exit
PB: predicated region body
PF: predicated region fallthrough
CT: control target
= control target key end

     0   :  { %s1245_s0 = inlined_call_operand.hbm [shape: f32[2,32,32], index: 0, kind: input, shape index: {}]   ;;  %s1246_s1 = inlined_call_operand.hbm [shape: f32[2,32,32], index: 1, kind: input, shape index: {}]   ;;  %s1247_s2 = inlined_call_operand.hbm [shape: f32[128,128], index: 2, kind: input, shape index: {}]   ;;  %s1248_s3 = inlined_call_operand.hbm [shape: f32[128,128], index: 3, kind: input, shape index: {}]   ;;  %s1249_s4 = inlined_call_operand.hbm [shape: f32[2,16,16], index: 4, kind: output, shape index: {}]  }
   0x1   :  { %1254 = sst [smem:[#allocation18_spill]] %s1247_s2 }
   0x2   :  { %1255 = sst [smem:[#allocation19_spill]] %s1248_s3 }
   0x3   :  { %9 = vsyncpa [#allocation3], 0 }
   0x4   :  { %11 = vsyncpa [#allocation3 + $0x1], 0 }
   0x5   :  { %12 = vsyncpa [#allocation6], 0 }
   0x6   :  { %14 = vsyncpa [#allocation6 + $0x1], 0 }
   0x7   :  { %15 = vsyncpa [#allocation9], 0 }
   0x8   :  { %16 = vsyncpa [#allocation4], 0 }
   0x9   :  { %18 = vsyncpa [#allocation4 + $0x1], 0  ;;  %s1050_s15 = smov 0   ;;  %s1052_s16 = smov 0  }
   0xa   :  { %s1054_s17 = smov 0   ;;  %s1056_s18 = smov 0  }
   0xb   :  { %s1058_s19 = smov 0   ;;  %s1060_s20 = smov 0  }
   0xc LB: > { %1256 = sst [smem:[#allocation16_spill]] %s1010_s19  ;;  %s1081_s21 = sadd.s32 4294967295, %s1014_s20   ;;  %s1014_s20 = sphi %s1060_s20, %s24_s20   ;;  %s1010_s19 = sphi %s1058_s19, %s1268_s19   ;;  %s1006_s18 = sphi %s1056_s18, %s1267_s18   ;;  %s1002_s17 = sphi %s1054_s17, %s1271_s17   ;;  %s998_s16 = sphi %s1052_s16, %s1270_s16   ;;  %s994_s15 = sphi %s1050_s15, %s1269_s15  }
   0xd   : > { %s643_s22 = sadd.s32 4294967294, %s1014_s20   ;;  %p58_p0 = scmp.ne.s32.totalorder %s998_s16, %s994_s15 }
   0xe   : > { %p59_p1 = scmp.eq.s32.totalorder %s1081_s21, 0  ;;  %p158_p2 = scmp.eq.s32.totalorder %s1081_s21, 1 }
   0xf   : > { %p164_p3 = scmp.eq.s32.totalorder %s643_s22, 1  ;;  %p644_p5 = scmp.ge.s32.totalorder %s1014_s20, 1 }
  0x10   : > { %p1090_p4 = por %p59_p1, %p58_p0  ;;  %p171_p7 = scmp.lt.s32.totalorder %s1014_s20, 3 }
  0x11   : > { %p1095_p6 = por %p164_p3, %p58_p0  ;;  %s1259_s2 = sld [smem:[#allocation18_spill]] }
  0x12   : > { %p1103_p8 = pnand %p644_p5, %p171_p7  ;;  %s1016_s29 = smov [#allocation7]  }
  0x13   : > { %s184_s30 = sshll.u32 %s1016_s29, 4  ;;  %p647_p11 = scmp.ge.s32.totalorder %s1014_s20, 2  ;;  %s185_s30 = int_to_ptr.vmem [resolvable:$true] %s184_s30 }
  0x14   : > { %p714_p9 = pneg %p1103_p8  ;;  %s1261_s3 = sld [smem:[#allocation19_spill]] }
  0x15   : > { %s1250_s8 = smov 128   ;;  %s1251_s9 = smov 8  }
  0x16   : > { %p715_p10 = pnand %p714_p9, %p59_p1  ;;  %s1019_s10 = smov [#allocation8]  }
  0x17   : > { %s182_s27 = sshll.u32 %s1259_s2, 4  ;;  %s198_s11 = sshll.u32 %s1019_s10, 4  ;;  %s183_s27 = int_to_ptr.hbm [resolvable:$true] %s182_s27  ;;  %s199_s11 = int_to_ptr.vmem [resolvable:$true] %s198_s11 }
  0x18   : > { %717 = dma.hbm_to_vmem [thread:$0]  (!%p715_p10), %s183_s27, 2048, %s185_s30, [#allocation6], %s1250_s8, %s1250_s8, %s1251_s9  }
  0x19   : > { %s36_s12 = sadd.s32 1, %s1010_s19  ;;  %s45_s13 = sadd.s32 1, %s1002_s17 }
  0x1a   : > { %s196_s7 = sshll.u32 %s1261_s3, 4  ;;  %p38_p12 = scmp.ge.s32.totalorder %s36_s12, 2  ;;  %s197_s7 = int_to_ptr.hbm [resolvable:$true] %s196_s7 }
  0x1b   : > { %720 = dma.hbm_to_vmem [thread:$0]  (!%p715_p10), %s197_s7, 2048, %s199_s11, [#allocation9], %s1250_s8, %s1250_s8, %s1251_s9  }
  0x1c   : > { %p52_p13 = scmp.ne.s32.totalorder %s1002_s17, %s998_s16  ;;  %p53_p0 = scmp.eq.s32.totalorder %s1014_s20, 0 }
  0x1d   : > { %p734_p3 = scmp.lt.s32.totalorder %s1014_s20, 2  ;;  %s1273_s12 = smov (%p38_p12, %s36_s12), 0 }
  0x1e   : > { %1262 = sst [smem:[#allocation17_spill]] %s1273_s12  ;;  %p1129_p5 = por %p53_p0, %p52_p13 }
  0x1f   : > { %p1135_p7 = por %p158_p2, %p52_p13  ;;  %s40_s25 = ssub.s32 %s1010_s19, %s1273_s12 }
  0x20   : > { %s212_s26 = sand.u32 1, %s1002_s17   ;;  %p43_p9 = scmp.eq.s32.totalorder %s40_s25, 0 }
  0x21   : > { %s648_s27 = sshll.u32 %s212_s26, 4  ;;  %s665_s29 = sshll.u32 %s1010_s19, 5 }
  0x22   : > { %s1144_s30 = scalar_select %p43_p9, %s1002_s17, %s45_s13  }
  0x23   : > { %s223_s7 = scalar_lea.hbm %s1245_s0, %s665_s29  ;;  %s216_s11 = scalar_lea.vmem [#allocation2], %s648_s27 }
  0x24   : > { %s224_s10 = sshll.u32 %s223_s7, 4  ;;  %s226_s8 = sshll.u32 %s216_s11, 4  ;;  %s225_s10 = int_to_ptr.hbm [resolvable:$true] %s224_s10  ;;  %s227_s8 = int_to_ptr.vmem [resolvable:$true] %s226_s8 }
  0x25   : > { %p722_p2 = pnand %p734_p3, %p1129_p5  ;;  %s236_s9 = sand.u32 1, %s1014_s20  }
  0x26   : > { %s651_s2 = sshll.u32 %s212_s26, 3  ;;  %s213_s3 = scalar_lea.sflag [#allocation3], %s212_s26 }
  0x27   : > { %s1265_s25 = smov 8   ;;  %s1266_s12 = smov 128  }
  0x28   : > { %724 = dma.hbm_to_vmem [thread:$0]  (!%p722_p2), %s225_s10, 256, %s227_s8, %s213_s3, %s1266_s12, %s1266_s12, %s1265_s25  }
  0x29   : > { %s556_s5 = scalar_lea.hbm %s1246_s1, %s665_s29  ;;  %s240_s6 = scalar_lea.vmem [#allocation5], %s651_s2 }
  0x2a   : > { %s252_s7 = sshll.u32 %s240_s6, 4  ;;  %s557_s27 = scalar_lea.hbm %s556_s5, 16  ;;  %s253_s7 = int_to_ptr.vmem [resolvable:$true] %s252_s7 }
  0x2b   : > { %s250_s11 = sshll.u32 %s557_s27, 4  ;;  %s237_s14 = scalar_lea.sflag [#allocation6], %s236_s9  ;;  %s251_s11 = int_to_ptr.hbm [resolvable:$true] %s250_s11 }
  0x2c   : > { %727 = dma.hbm_to_vmem [thread:$0]  (!%p722_p2), %s251_s11, 128, %s253_s7, %s237_s14  }
  0x2d   : > { %261 = sbr.rel (%p1103_p8) target bundleno = 635 (0x27b), region = 36  ;;  %s1163_s26 = sand.u32 (!%p1103_p8), 1, %s998_s16  }
  0x2e   : > { %s655_s3 = sshll.u32 (!%p1103_p8), %s1163_s26, 4  ;;  %s264_s19 = scalar_lea.sflag (!%p1103_p8), [#allocation3], %s1163_s26 }
  0x2f   : > { %s267_s2 = scalar_lea.vmem (!%p1103_p8), [#allocation2], %s655_s3 }
  0x32   : > { %973 = dma.done.wait (%p1090_p4), %s264_s19, 256  }
  0x33   : > { %975 = vsyncadd (%p1090_p4), %s264_s19, 4294967040  ;;  %s273_s28 = sand.u32 1, %s1081_s21   ;;  %s656_s8 = sshll.u32 %s1163_s26, 3 }
  0x34   : > { %s274_s9 = scalar_lea.sflag [#allocation6], %s273_s28  ;;  %s277_s12 = scalar_lea.vmem [#allocation5], %s656_s8 }
  0x35   : > { %977 = dma.done.wait (%p1090_p4), %s274_s9, 128  }
  0x36   : > { %979 = vsyncadd (%p1090_p4), %s274_s9, 4294967168 }
  0x37   : > { %981 = dma.done.wait (%p59_p1), [#allocation6], 2048  }
  0x38   : > { %983 = vsyncadd (%p59_p1), [#allocation6], 4294965248 }
  0x39   : > { %985 = dma.done.wait (%p59_p1), [#allocation9], 2048  }
  0x3a   : > { %987 = vsyncadd (%p59_p1), [#allocation9], 4294965248  ;;  %v1187_v0 = vld [vmem:[%s267_s2 + $0x8] sm:$0xff]  ;;  %v323_v1 = vld [vmem:[%s277_s12] sm:$0xff]  ;;  %vm351_vm0 = vcmask 1044480   ;;  %vm327_vm1 = vcmask 1046528  }
  0x3b   : > { %v353_v2 = vrot.slane %v1187_v0, 3  ;;  %v355_v3 = vrot.slane %v323_v1, 3  ;;  %v329_v4 = vrot.slane %v1187_v0, 1  ;;  %v331_v5 = vrot.slane %v323_v1, 1  ;;  %v1191_v6 = vld [vmem:[%s267_s2] sm:$0xff]  ;;  %v387_v7 = vld [vmem:[#allocation7 + $0x78] sm:$0xff] }
  0x3c   : > { %v341_v8 = vrot.slane %v1187_v0, 2  ;;  %v340_v9 = vrot.slane %v1191_v6, 2  ;;  %668 = vmatpush.msra.mxu2 %v387_v7  ;;  %404 = vmatpush.msra.mxu0 %v387_v7  ;;  %v386_v10 = vld [vmem:[#allocation7 + $0x70] sm:$0xff]  ;;  %vm339_vm2 = vcmask 1045504   ;;  %s1020_s21 = smov 96   ;;  %s1021_s23 = smov 32  }
  0x3d   : > { %v356_v11 = vsel %vm351_vm0, %v353_v2, %v355_v3  ;;  %v332_v12 = vsel %vm327_vm1, %v329_v4, %v331_v5  ;;  %v385_v14 = vld [vmem:[#allocation7 + $0x68] sm:$0xff]  ;;  %v343_v15 = vrot.slane %v323_v1, 2  ;;  %v328_v16 = vrot.slane %v1191_v6, 1  ;;  %s1022_s29 = smov 64   ;;  %v384_v18 = vld [vmem:[#allocation7 + $0x60] sm:$0xff]  ;;  %v383_v19 = vld [vmem:[#allocation7 + $0x58] sm:$0xff] }
  0x3e   : > { %359 = vrot.lane.b32.xlu1 %v356_v11, %s1020_s21  ;;  %335 = vrot.lane.b32.xlu0 %v332_v12, %s1021_s23  ;;  %v342_v13 = vsel %vm339_vm2, %v340_v9, %v341_v8  ;;  %v352_v17 = vrot.slane %v1191_v6, 3  ;;  %v382_v23 = vld [vmem:[#allocation7 + $0x50] sm:$0xff]  ;;  %v381_v24 = vld [vmem:[#allocation7 + $0x48] sm:$0xff]  ;;  %v380_v25 = vld [vmem:[#allocation7 + $0x40] sm:$0xff]  ;;  %vm363_vm3 = vcmask 261120   ;;  %vm366_vm4 = vcmask 523264  }
  0x3f   : > { %345 = vrot.lane.b32.xlu2 %v342_v13, %s1022_s29  ;;  %669 = vmatpush.msra.mxu2 %v386_v10  ;;  %v344_v20 = vsel %vm339_vm2, %v341_v8, %v343_v15  ;;  %v330_v21 = vsel %vm327_vm1, %v328_v16, %v329_v4  ;;  %v379_v26 = vld [vmem:[#allocation7 + $0x38] sm:$0xff]  ;;  %v378_v27 = vld [vmem:[#allocation7 + $0x30] sm:$0xff]  ;;  %v377_v28 = vld [vmem:[#allocation7 + $0x28] sm:$0xff]  ;;  %vm369_vm5 = vcmask 785408   ;;  %s667_s10 = sshll.u32 %s1006_s18, 4  ;;  %vm490_vm6 = vcmask 130048  }
  0x40   : > { %405 = vmatpush.msra.mxu0 %v386_v10  ;;  %v354_v22 = vsel %vm351_vm0, %v352_v17, %v353_v2  ;;  %v376_v29 = vld [vmem:[#allocation7 + $0x20] sm:$0xff]  ;;  %v375_v30 = vld [vmem:[#allocation7 + $0x18] sm:$0xff]  ;;  %v374_v31 = vld [vmem:[#allocation7 + $0x10] sm:$0xff]  ;;  %s506_s5 = scalar_lea.hbm %s1249_s4, %s667_s10  ;;  %s317_s6 = scalar_lea.vmem [#allocation10], %s655_s3 }
  0x41   : > { %670 = vmatpush.msra.mxu2 %v385_v14  ;;  %v373_v32 = vld [vmem:[#allocation7 + $0x8] sm:$0xff]  ;;  %v372_v33 = vld [vmem:[#allocation7] sm:$0xff]  ;;  %v403_v34 = vld [vmem:[#allocation8 + $0x78] sm:$0xff]  ;;  %s507_s7 = sshll.u32 %s317_s6, 4  ;;  %s509_s27 = sshll.u32 %s506_s5, 4  ;;  %s508_s7 = int_to_ptr.vmem [resolvable:$true] %s507_s7  ;;  %s510_s27 = int_to_ptr.hbm [resolvable:$true] %s509_s27 }
  0x42   : > { %406 = vmatpush.msra.mxu0 %v385_v14  ;;  %v402_v35 = vld [vmem:[#allocation8 + $0x70] sm:$0xff]  ;;  %429 = vmatpush.msra.mxu1 %v403_v34  ;;  %v401_v36 = vld [vmem:[#allocation8 + $0x68] sm:$0xff]  ;;  %v400_v37 = vld [vmem:[#allocation8 + $0x60] sm:$0xff]  ;;  %s494_s11 = scalar_lea.sflag [#allocation4], %s1163_s26  ;;  %s934_s14 = sshra.s32 %s510_s27, 4  ;;  %s935_s14 = int_to_ptr.hbm [resolvable:$true] %s934_s14 }
  0x43   : > { %671 = vmatpush.msra.mxu2 %v384_v18  ;;  %684 = vmatpush.msra.mxu3 %v403_v34  ;;  %v399_v38 = vld [vmem:[#allocation8 + $0x58] sm:$0xff]  ;;  %v398_v39 = vld [vmem:[#allocation8 + $0x50] sm:$0xff]  ;;  %v397_v40 = vld [vmem:[#allocation8 + $0x48] sm:$0xff]  ;;  %s936_s18 = scalar_lea.hbm %s935_s14, 16  ;;  %s940_s28 = scalar_lea.hbm %s1249_s4, 32 }
  0x44   : > { %407 = vmatpush.msra.mxu0 %v384_v18  ;;  %430 = vmatpush.msra.mxu1 %v402_v35  ;;  %v396_v41 = vld [vmem:[#allocation8 + $0x40] sm:$0xff]  ;;  %v395_v42 = vld [vmem:[#allocation8 + $0x38] sm:$0xff]  ;;  %v394_v43 = vld [vmem:[#allocation8 + $0x30] sm:$0xff]  ;;  %p937_p1 = scmp.ne.s32.totalorder %s935_s14, %s936_s18  ;;  %p941_p10 = scmp.lt.s32.totalorder %s935_s14, %s1249_s4 }
  0x45   : > { %672 = vmatpush.msra.mxu2 %v383_v19  ;;  %685 = vmatpush.msra.mxu3 %v402_v35  ;;  %v393_v45 = vld [vmem:[#allocation8 + $0x28] sm:$0xff]  ;;  %v392_v48 = vld [vmem:[#allocation8 + $0x20] sm:$0xff]  ;;  %v391_v49 = vld [vmem:[#allocation8 + $0x18] sm:$0xff]  ;;  %p942_p12 = scmp.lt.s32.totalorder %s940_s28, %s936_s18 }
  0x46   : > { %347 = vrot.lane.b32.xlu0 %v344_v20, %s1022_s29  ;;  %333 = vrot.lane.b32.xlu1 %v330_v21, %s1021_s23  ;;  %v390_v50 = vld [vmem:[#allocation8 + $0x10] sm:$0xff]  ;;  %v389_v60 = vld [vmem:[#allocation8 + $0x8] sm:$0xff]  ;;  %v388_v61 = vld [vmem:[#allocation8] sm:$0xff]  ;;  %p938_p4 = pnand %p937_p1, %p1135_p7 }
  0x47   : > { %357 = vrot.lane.b32.xlu2 %v354_v22, %s1020_s21  ;;  %408 = vmatpush.msra.mxu0 %v383_v19  ;;  %p943_p13 = por %p942_p12, %p941_p10 }
  0x48   : > { %673 = vmatpush.msra.mxu2 %v382_v23  ;;  %431 = vmatpush.msra.mxu1 %v401_v36  ;;  %p939_p8 = pneg %p938_p4 }
  0x49   : > { %409 = vmatpush.msra.mxu0 %v382_v23  ;;  %686 = vmatpush.msra.mxu3 %v401_v36 }
  0x4a   : > { %674 = vmatpush.msra.mxu2 %v381_v24  ;;  %432 = vmatpush.msra.mxu1 %v400_v37  ;;  %p944_p0 = pnand %p943_p13, %p939_p8 }
  0x4b   : > { %410 = vmatpush.msra.mxu0 %v381_v24  ;;  %687 = vmatpush.msra.mxu3 %v400_v37 }
  0x4c   : > { %675 = vmatpush.msra.mxu2 %v380_v25  ;;  %433 = vmatpush.msra.mxu1 %v399_v38 }
  0x4d   : > { %411 = vmatpush.msra.mxu0 %v380_v25  ;;  %688 = vmatpush.msra.mxu3 %v399_v38 }
  0x4e   : > { %676 = vmatpush.msra.mxu2 %v379_v26  ;;  %434 = vmatpush.msra.mxu1 %v398_v39 }
  0x4f   : > { %412 = vmatpush.msra.mxu0 %v379_v26  ;;  %689 = vmatpush.msra.mxu3 %v398_v39 }
  0x50   : > { %677 = vmatpush.msra.mxu2 %v378_v27  ;;  %435 = vmatpush.msra.mxu1 %v397_v40 }
  0x51   : > { %413 = vmatpush.msra.mxu0 %v378_v27  ;;  %690 = vmatpush.msra.mxu3 %v397_v40 }
  0x52   : > { %678 = vmatpush.msra.mxu2 %v377_v28  ;;  %436 = vmatpush.msra.mxu1 %v396_v41 }
  0x53   : > { %414 = vmatpush.msra.mxu0 %v377_v28  ;;  %691 = vmatpush.msra.mxu3 %v396_v41 }
  0x54   : > { %679 = vmatpush.msra.mxu2 %v376_v29  ;;  %437 = vmatpush.msra.mxu1 %v395_v42 }
  0x55   : > { %415 = vmatpush.msra.mxu0 %v376_v29  ;;  %692 = vmatpush.msra.mxu3 %v395_v42 }
  0x56   : > { %680 = vmatpush.msra.mxu2 %v375_v30  ;;  %438 = vmatpush.msra.mxu1 %v394_v43 }
  0x57   : > { %416 = vmatpush.msra.mxu0 %v375_v30  ;;  %693 = vmatpush.msra.mxu3 %v394_v43 }
  0x58   : > { %681 = vmatpush.msra.mxu2 %v374_v31  ;;  %439 = vmatpush.msra.mxu1 %v393_v45 }
  0x59   : > { %417 = vmatpush.msra.mxu0 %v374_v31  ;;  %694 = vmatpush.msra.mxu3 %v393_v45 }
  0x5a   : > { %682 = vmatpush.msra.mxu2 %v373_v32  ;;  %440 = vmatpush.msra.mxu1 %v392_v48 }
  0x5b   : > { %418 = vmatpush.msra.mxu0 %v373_v32  ;;  %695 = vmatpush.msra.mxu3 %v392_v48 }
  0x5c   : > { %683 = vmatpush.msra.mxu2 %v372_v33  ;;  %441 = vmatpush.msra.mxu1 %v391_v49 }
  0x5d   : > { %419 = vmatpush.msra.mxu0 %v372_v33  ;;  %696 = vmatpush.msra.mxu3 %v391_v49 }
  0x5e   : > { %442 = vmatpush.msra.mxu1 %v390_v50 }
  0x5f   : > { %697 = vmatpush.msra.mxu3 %v390_v50 }
  0x60   : > { %443 = vmatpush.msra.mxu1 %v389_v60 }
  0x61   : > { %698 = vmatpush.msra.mxu3 %v389_v60 }
  0x62   : > { %444 = vmatpush.msra.mxu1 %v388_v61 }
  0x63   : > { %699 = vmatpush.msra.mxu3 %v388_v61 }
  0x99   : > { %v346_v44 = vpop.permute.xlu2 %345 }
  0xa1   : > { %v358_v51 = vpop.permute.xlu2 %357 }
  0xb0   : > { %v360_v46 = vpop.permute.xlu1 %359  ;;  %v336_v47 = vpop.permute.xlu0 %335 }
  0xb1   : > { %v365_v52 = vsel %vm363_vm3, %v1187_v0, %v336_v47 }
  0xb8   : > { %v348_v53 = vpop.permute.xlu0 %347  ;;  %v334_v54 = vpop.permute.xlu1 %333 }
  0xb9   : > { %v368_v55 = vsel %vm366_vm4, %v365_v52, %v348_v53  ;;  %v364_v56 = vsel %vm363_vm3, %v1191_v6, %v334_v54 }
  0xba   : > { %v371_v57 = vsel %vm369_vm5, %v368_v55, %v360_v46  ;;  %v367_v58 = vsel %vm366_vm4, %v364_v56, %v346_v44 }
  0xbb   : > { %423 = vmatmul.f32.vlgmr.msra.gmra.mxu2 %v371_v57  ;;  %v370_v59 = vsel %vm369_vm5, %v367_v58, %v358_v51 }
  0xbc   : > { %420 = vmatmul.f32.vlgmr.msra.gmra.mxu0 %v370_v59 }
 0x139   : > { %v421_v62 = vpop.f32.mrf.mxu0 }
 0x13a   : > { %v427_v63 = vmul.f32 %v421_v62, %v421_v62 }
 0x13c   : > { %445 = vmatmul.f32.vlgmr.msra.gmra.mxu1 %v427_v63 }
 0x13e   : > { %v424_v0 = vpop.f32.mrf.mxu2 }
 0x13f   : > { %v428_v1 = vmul.f32 %v424_v0, %v424_v0 }
 0x141   : > { %448 = vmatmul.f32.vlgmr.msra.gmra.mxu3 %v428_v1 }
 0x1b9   : > { %v446_v2 = vpop.f32.mrf.mxu1 }
 0x1ba   : > { %v447_v3 = vadd.f32 1e-05, %v446_v2 }
 0x1bc   : > { %796 = vlog2.f32 %v447_v3 }
 0x1c2   : > { %v797_v4 = vpop.eup %796 }
 0x1c3   : > { %v453_v5 = vmul.f32 0.6931472, %v797_v4 }
 0x1c4   : > { %v449_v6 = vpop.f32.mrf.mxu3 }
 0x1c5   : > { %v450_v7 = vadd.f32 1e-05, %v449_v6  ;;  %v456_v8 = vmul.f32 0.4342945, %v453_v5 }
 0x1c7   : > { %798 = vlog2.f32 %v450_v7  ;;  %458 = vxpose.xlu0.b32.start [1/2] (short) (narrow) %v456_v8, 16 }
 0x1cd   : > { %v799_v9 = vpop.eup %798 }
 0x1ce   : > { %v455_v10 = vmul.f32 0.6931472, %v799_v9 }
 0x1d0   : > { %v457_v11 = vmul.f32 0.4342945, %v455_v10 }
 0x1d2   : > { %459 = vxpose.xlu0.b32.end [2/2] (short) (narrow) %v457_v11, 16 }
 0x26e   : > { %v474_v12 = vpop.trf.xlu0 }
 0x26f   : > { %491 = vst.msk [vmem:[%s317_s6] sm:$0xff] %vm490_vm6, %v474_v12 }
 0x276   : > { %v475_v13 = vpop.trf.xlu0 }
 0x277   : > { %492 = vst.msk [vmem:[%s317_s6 + $0x8] sm:$0xff] %vm490_vm6, %v475_v13 }
 0x278   : > { %947 = shalt.err (!%p944_p0)
}
 0x279   : > { %s1023_s26 = smov 128   ;;  %s1024_s9 = smov 8  }
 0x27a   : > { %712 = dma.vmem_to_hbm [thread:$0]  (%p1135_p7), %s508_s7, 256, %s510_s27, %s494_s11, %s1023_s26, %s1023_s26, %s1024_s9  }
 0x27b PF: > { %s524_s12 = sand.u32 1, %s994_s15   ;;  %p729_p3 = pnand %p647_p11, %p1095_p6 }
 0x27c   : > { %s525_s21 = scalar_lea.sflag [#allocation4], %s524_s12 }
 0x27d   : > { %p730_p5 = pneg %p729_p3 }
 0x27f   : > { %989 = dma.done.wait (%p730_p5), %s525_s21, 256  }
 0x280   : > { %991 = vsyncadd (%p730_p5), %s525_s21, 4294967040  ;;  %s24_s20 = sadd.s32 1, %s1014_s20   ;;  %s1267_s18 = sld [smem:[#allocation16_spill]] }
 0x281   : > { %p21_p9 = scmp.ge.s32.totalorder %s24_s20, 4   ;;  %s1268_s19 = sld [smem:[#allocation17_spill]] }
 0x282   : > { %s1269_s15 = smov %s998_s16  ;;  %s1270_s16 = smov %s1002_s17 }
 0x283   : > { %s1271_s17 = smov %s1144_s30  ;;  %23 = sbr.rel (!%p21_p9) target bundleno = 12 (0xc), region = 102 }
 0x288   :  { %531 = vsyncpa [#allocation3], 1 }
 0x289   :  { %533 = vsyncpa [#allocation3 + $0x1], 1 }
 0x28a   :  { %534 = vsyncpa [#allocation6], 1 }
 0x28b   :  { %536 = vsyncpa [#allocation6 + $0x1], 1 }
 0x28c   :  { %537 = vsyncpa [#allocation9], 1 }
 0x28d   :  { %538 = vsyncpa [#allocation4], 1 }
 0x28e   :  { %540 = vsyncpa [#allocation4 + $0x1], 1 }

</bundles_post_ra>
